<compile_context>
chip_gen: v7x
topology: tpu7x:2x2x1
jax: 0.10.0
libtpu: 0.0.40
codegen_flags: <defaults>
</compile_context>

<pallas_src>
import functools

import jax
import jax.numpy as jnp
from jax import lax
from jax.experimental import pallas as pl
from jax.experimental.pallas import tpu as pltpu


def _sq_diff_kernel(x_ref, y_ref, o_ref, acc_ref, *,
                    m_rows, tm, spp, steps_total, acc_rows, need_mask):
    p = pl.program_id(0)   # partition (parallel across TensorCores where available)
    j = pl.program_id(1)   # reduction step within the partition

    @pl.when(j == 0)
    def _():
        acc_ref[...] = jnp.zeros_like(acc_ref)

    def _accumulate(masked):
        d = x_ref[...].astype(jnp.float32) - y_ref[...].astype(jnp.float32)
        if masked:
            # Zero rows past the logical end (ragged last tile and/or the clamped
            # overflow tile from an uneven per-core split).  Mask BEFORE squaring
            # so garbage rows (possibly NaN) contribute exactly 0.
            row = lax.broadcasted_iota(jnp.int32, d.shape, 0)
            global_row = (p * spp + j) * tm + row
            d = jnp.where(global_row < m_rows, d, 0.0)
        sq = d * d
        if tm != acc_rows:
            # Fold over the row-tile axis first (sublane-aligned, layout-preserving
            # reshape; pure cross-vreg VPU adds), then touch the small accumulator.
            sq = jnp.sum(sq.reshape(tm // acc_rows, acc_rows, sq.shape[-1]), axis=0)
        acc_ref[...] += sq

    if need_mask:
        # Only edge tiles (last real tile + any overflow tile) pay for the mask;
        # the steady-state interior loop is the unmasked path.
        is_edge = (p * spp + j) >= (steps_total - 1)

        @pl.when(jnp.logical_not(is_edge))
        def _():
            _accumulate(False)

        @pl.when(is_edge)
        def _():
            _accumulate(True)
    else:
        _accumulate(False)

    @pl.when(j == pl.num_programs(1) - 1)
    def _():
        # One cross-lane reduce per partition; broadcast into a lane-dense
        # (1, 8, 128) output block (unmasked store).
        o_ref[...] = jnp.zeros((1, 8, 128), jnp.float32) + jnp.sum(acc_ref[...])


def _default_num_partitions():
    """2 only on chips whose two TensorCores sit behind one Pallas call."""
    try:
        kind = jax.devices()[0].device_kind.lower()
    except Exception:
        return 1
    if ("7" in kind) or ("v4" in kind) or ("v5p" in kind):
        return 2
    return 1


def _choose_tm(m, d_lane, tile_bytes, itemsize):
    if m <= 8:
        return m                       # full-dim block, always legal
    tm = tile_bytes // (d_lane * itemsize)
    tm = max(8, (tm // 8) * 8)         # multiple of 8 (sublane rule)
    return m if tm >= m else tm


def img_w_loss(latent, des_latent, *, tile_bytes=4 << 20, num_partitions=None):
    """F.mse_loss(latent, des_latent, reduction='mean') via a Pallas TPU kernel."""
    assert latent.shape == des_latent.shape, (latent.shape, des_latent.shape)
    n = latent.size
    x_flat = latent.reshape(-1)
    y_flat = des_latent.reshape(-1)

    # Lane-dense width: largest multiple of 128 that divides n, else 128.
    d_lane = 128
    for cand in (4096, 2048, 1024, 512, 256, 128):
        if n % cand == 0:
            d_lane = cand
            break

    m = n // d_lane
    rem = n - m * d_lane

    # Tiny tail (< 128 elements) handled in plain JAX.
    tail_sum = jnp.zeros((), jnp.float32)
    if rem:
        tx = x_flat[m * d_lane:].astype(jnp.float32)
        ty = y_flat[m * d_lane:].astype(jnp.float32)
        tail_sum = jnp.sum((tx - ty) ** 2)

    if m == 0:
        # Fewer than 128 elements total: plain JAX is correct and fastest.
        return tail_sum / n

    if rem:
        # Cold path (n % 128 != 0): the prefix slice may materialize one extra
        # HBM copy of each input.  Latent codes are normally 128-divisible.
        xb = x_flat[: m * d_lane].reshape(m, d_lane)
        yb = y_flat[: m * d_lane].reshape(m, d_lane)
    else:
        xb = x_flat.reshape(m, d_lane)   # free reshape, no copy
        yb = y_flat.reshape(m, d_lane)

    itemsize = max(jnp.dtype(latent.dtype).itemsize,
                   jnp.dtype(des_latent.dtype).itemsize)
    tm = _choose_tm(m, d_lane, tile_bytes, itemsize)
    steps_total = -(-m // tm)

    if num_partitions is None:
        num_partitions = _default_num_partitions()
    num_parts = max(1, min(num_partitions, steps_total))

    # If the block count does not split evenly across partitions, nudge tm down
    # (in sublane steps) to avoid a wasted clamped-overflow tile when possible.
    if num_parts > 1 and steps_total % num_parts != 0:
        t, tries = tm - 8, 0
        while t >= 8 and tries < 64:
            s = -(-m // t)
            if s % num_parts == 0:
                tm, steps_total = t, s
                break
            t -= 8
            tries += 1

    spp = -(-steps_total // num_parts)              # grid steps per partition
    has_overflow = spp * num_parts != steps_total
    need_mask = has_overflow or (m % tm != 0)
    acc_rows = 8 if tm % 8 == 0 else tm             # small accumulator when possible

    def in_index_map(p, j):
        gb = p * spp + j
        if has_overflow:
            # Keep the DMA origin in-bounds; the kernel masks this tile to zero.
            gb = jnp.minimum(gb, steps_total - 1)
        return (gb, 0)

    kernel = functools.partial(
        _sq_diff_kernel, m_rows=m, tm=tm, spp=spp,
        steps_total=steps_total, acc_rows=acc_rows, need_mask=need_mask)

    cost = pl.CostEstimate(
        flops=3 * m * d_lane,
        transcendentals=0,
        bytes_accessed=2 * m * d_lane * itemsize + num_parts * 8 * 128 * 4,
    )

    partials = pl.pallas_call(
        kernel,
        out_shape=jax.ShapeDtypeStruct((num_parts, 8, 128), jnp.float32),
        grid_spec=pltpu.PrefetchScalarGridSpec(
            num_scalar_prefetch=0,
            grid=(num_parts, spp),
            in_specs=[
                pl.BlockSpec((tm, d_lane), in_index_map),
                pl.BlockSpec((tm, d_lane), in_index_map),
            ],
            out_specs=pl.BlockSpec((1, 8, 128), lambda p, j: (p, 0, 0)),
            scratch_shapes=[pltpu.VMEM((acc_rows, d_lane), jnp.float32)],
        ),
        compiler_params=pltpu.CompilerParams(
            dimension_semantics=("parallel", "arbitrary"),
            vmem_limit_bytes=48 * 1024 * 1024,
        ),
        cost_estimate=cost,
    )(xb, yb)

    total = jnp.sum(partials[:, 0, 0]) + tail_sum
    return total / n


if __name__ == "__main__":
    key = jax.random.PRNGKey(0)
    ks = jax.random.split(key, 6)

    def ref_mse(a, b):
        return jnp.mean((a.astype(jnp.float32) - b.astype(jnp.float32)) ** 2)

    # Case 1: small w-latent, (batch=2, layers=8, dim=32), f32.
    x1 = jax.random.normal(ks[0], (2, 8, 32), dtype=jnp.float32)
    y1 = jax.random.normal(ks[1], (2, 8, 32), dtype=jnp.float32)
    l1 = jax.block_until_ready(img_w_loss(x1, y1))
    r1 = ref_mse(x1, y1)
    assert jnp.allclose(l1, r1, rtol=1e-5, atol=1e-6), (l1, r1)

    # Case 2: forces the multi-step grid, explicit 2-way partition (overflow +
    # clamped tile), ragged last tile, and the masked edge branch.
    x2 = jax.random.normal(ks[2], (37, 512), dtype=jnp.float32)
    y2 = jax.random.normal(ks[3], (37, 512), dtype=jnp.float32)
    l2 = jax.block_until_ready(
        img_w_loss(x2, y2, tile_bytes=8 * 512 * 4, num_partitions=2))
    r2 = ref_mse(x2, y2)
    assert jnp.allclose(l2, r2, rtol=1e-5, atol=1e-6), (l2, r2)

    # Case 3: bf16 inputs with an element count not divisible by 128
    # (exercises the JAX-side tail path).
    x3 = jax.random.normal(ks[4], (3, 5, 50), dtype=jnp.bfloat16)
    y3 = jax.random.normal(ks[5], (3, 5, 50), dtype=jnp.bfloat16)
    l3 = jax.block_until_ready(img_w_loss(x3, y3))
    r3 = ref_mse(x3, y3)
    assert jnp.allclose(l3, r3, rtol=1e-5, atol=1e-6), (l3, r3)

    print("KERNEL_OK")
</pallas_src>

<mosaic_0001>
module attributes {stable_mosaic.version = 11 : i64} {
  func.func @_sq_diff_kernel(%arg0: i32, %arg1: i32, %arg2: memref<1x512xf32, #tpu.memory_space<vmem>>, %arg3: memref<1x512xf32, #tpu.memory_space<vmem>>, %arg4: memref<1x8x128xf32, #tpu.memory_space<vmem>>, %arg5: memref<1x512xf32, #tpu.memory_space<vmem>>) attributes {dimension_semantics = [#tpu.dimension_semantics<parallel>, #tpu.dimension_semantics<arbitrary>], iteration_bounds = array<i64: 1, 1>, scalar_prefetch = 0 : i64, scratch_operands = 1 : i64, tpu.core_type = #tpu.core_type<tc>, window_params = [{transform_indices = @transform_0, window_bounds = array<i64: 1, 512>}, {transform_indices = @transform_1, window_bounds = array<i64: 1, 512>}, {transform_indices = @transform_2, window_bounds = array<i64: 1, 8, 128>}]} {
    %c0_i32 = arith.constant 0 : i32
    %0 = arith.cmpi eq, %arg1, %c0_i32 : i32
    %1 = arith.extui %0 : i1 to i32
    %c0_i32_0 = arith.constant 0 : i32
    %2 = arith.cmpi ne, %1, %c0_i32_0 : i32
    scf.if %2 {
      %cst = arith.constant 0.000000e+00 : f32
      %13 = vector.broadcast %cst : f32 to vector<1x512xf32>
      %c0_10 = arith.constant 0 : index
      %c0_11 = arith.constant 0 : index
      %14 = vector.load %arg5[%c0_10, %c0_11] : memref<1x512xf32, #tpu.memory_space<vmem>>, vector<1x512xf32>
      tpu.vector_store %arg5[%c0_10, %c0_11], %13 {strides = array<i32>} : memref<1x512xf32, #tpu.memory_space<vmem>>, vector<1x512xf32>,
    } else {
    }
    %c0 = arith.constant 0 : index
    %c0_1 = arith.constant 0 : index
    %3 = vector.load %arg2[%c0, %c0_1] : memref<1x512xf32, #tpu.memory_space<vmem>>, vector<1x512xf32>
    %c0_2 = arith.constant 0 : index
    %c0_3 = arith.constant 0 : index
    %4 = vector.load %arg3[%c0_2, %c0_3] : memref<1x512xf32, #tpu.memory_space<vmem>>, vector<1x512xf32>
    %5 = arith.subf %3, %4 : vector<1x512xf32>
    %6 = arith.mulf %5, %5 : vector<1x512xf32>
    %c0_4 = arith.constant 0 : index
    %c0_5 = arith.constant 0 : index
    %7 = vector.load %arg5[%c0_4, %c0_5] : memref<1x512xf32, #tpu.memory_space<vmem>>, vector<1x512xf32>
    %8 = arith.addf %7, %6 : vector<1x512xf32>
    %c0_6 = arith.constant 0 : index
    %c0_7 = arith.constant 0 : index
    %9 = vector.load %arg5[%c0_6, %c0_7] : memref<1x512xf32, #tpu.memory_space<vmem>>, vector<1x512xf32>
    tpu.vector_store %arg5[%c0_6, %c0_7], %8 {strides = array<i32>} : memref<1x512xf32, #tpu.memory_space<vmem>>, vector<1x512xf32>,
    %c0_i32_8 = arith.constant 0 : i32
    %10 = arith.cmpi eq, %arg1, %c0_i32_8 : i32
    %11 = arith.extui %10 : i1 to i32
    %c0_i32_9 = arith.constant 0 : i32
    %12 = arith.cmpi ne, %11, %c0_i32_9 : i32
    scf.if %12 {
      %cst = arith.constant 0.000000e+00 : f32
      %13 = vector.broadcast %cst : f32 to vector<1x8x128xf32>
      %c0_10 = arith.constant 0 : index
      %c0_11 = arith.constant 0 : index
      %14 = vector.load %arg5[%c0_10, %c0_11] : memref<1x512xf32, #tpu.memory_space<vmem>>, vector<1x512xf32>
      %15 = vector.shape_cast %14 : vector<1x512xf32> to vector<1x1x512xf32>
      %cst_12 = arith.constant dense<0.000000e+00> : vector<1xf32>
      %16 = vector.multi_reduction <add>, %15, %cst_12 [1, 2] : vector<1x1x512xf32> to vector<1xf32>
      %17 = vector.shape_cast %16 : vector<1xf32> to vector<1x1x1xf32>
      %18 = vector.extract %17[0, 0, 0] : f32 from vector<1x1x1xf32>
      %19 = vector.broadcast %18 : f32 to vector<1x8x128xf32>
      %20 = arith.addf %13, %19 : vector<1x8x128xf32>
      %c0_13 = arith.constant 0 : index
      %c0_14 = arith.constant 0 : index
      %c0_15 = arith.constant 0 : index
      %21 = vector.load %arg4[%c0_13, %c0_14, %c0_15] : memref<1x8x128xf32, #tpu.memory_space<vmem>>, vector<1x8x128xf32>
      tpu.vector_store %arg4[%c0_13, %c0_14, %c0_15], %20 {strides = array<i32>} : memref<1x8x128xf32, #tpu.memory_space<vmem>>, vector<1x8x128xf32>,
    } else {
    }
    return
  }
  func.func @transform_0(%arg0: i32, %arg1: i32) -> (i32, i32) {
    %c1_i32 = arith.constant 1 : i32
    %0 = arith.muli %arg0, %c1_i32 : i32
    %1 = arith.addi %0, %arg1 : i32
    %c0_i32 = arith.constant 0 : i32
    %c0_i32_0 = arith.constant 0 : i32
    return %1, %c0_i32 : i32, i32
  }
  func.func @transform_1(%arg0: i32, %arg1: i32) -> (i32, i32) {
    %c1_i32 = arith.constant 1 : i32
    %0 = arith.muli %arg0, %c1_i32 : i32
    %1 = arith.addi %0, %arg1 : i32
    %c0_i32 = arith.constant 0 : i32
    %c0_i32_0 = arith.constant 0 : i32
    return %1, %c0_i32 : i32, i32
  }
  func.func @transform_2(%arg0: i32, %arg1: i32) -> (i32, i32, i32) {
    %c0_i32 = arith.constant 0 : i32
    %c0_i32_0 = arith.constant 0 : i32
    %c0_i32_1 = arith.constant 0 : i32
    return %arg0, %c0_i32, %c0_i32_0 : i32, i32, i32
  }
}

</mosaic_0001>

<bundles_post_ra>
// kernel: tpu_custom_call.1
= control target key start
LH: loop header
LB: loop body
LE: loop exit
PB: predicated region body
PF: predicated region fallthrough
CT: control target
= control target key end

     0   :  { %7 = vsyncpa [#allocation4], 0  ;;  %s260_s0 = inlined_call_operand.hbm [shape: f32[1,512], index: 0, kind: input, shape index: {}]   ;;  %s261_s1 = inlined_call_operand.hbm [shape: f32[1,512], index: 1, kind: input, shape index: {}]   ;;  %s262_s2 = inlined_call_operand.hbm [shape: f32[1,8,128], index: 2, kind: output, shape index: {}]  }
   0x1   :  { %8 = vsyncpa [#allocation7], 0 }
   0x2   :  { %9 = vsyncpa [#allocation5], 0  ;;  %s205_s9 = smov [#allocation3]   ;;  %s206_s11 = smov [#allocation6]  }
   0x3   :  { %s20_s10 = sshll.u32 %s205_s9, 4  ;;  %s34_s12 = sshll.u32 %s206_s11, 4  ;;  %s21_s10 = int_to_ptr.vmem [resolvable:$true] %s20_s10  ;;  %s35_s12 = int_to_ptr.vmem [resolvable:$true] %s34_s12 }
   0x4   :  { %s133_s15 = scalar_lea.hbm %s260_s0, 64 }
   0x5   :  { %p134_p0 = scmp.ne.s32.totalorder %s260_s0, %s133_s15  ;;  %p137_p1 = scmp.lt.u32.totalorder %s133_s15, %s260_s0 }
   0x7   :  { %p139_p2 = pnand %p137_p1, %p134_p0 }
   0x9   :  { %142 = shalt.err (!%p139_p2)
}
   0xa   :  { %s143_s20 = scalar_lea.vmem %s21_s10, 64  ;;  %p148_p4 = scmp.lt.s32.totalorder %s21_s10, %s21_s10 }
   0xb   :  { %p144_p3 = scmp.ne.s32.totalorder %s21_s10, %s143_s20  ;;  %p149_p5 = scmp.lt.s32.totalorder %s143_s20, %s143_s20 }
   0xd   :  { %p150_p6 = por %p149_p5, %p148_p4 }
   0xf   :  { %p151_p7 = pnand %p150_p6, %p144_p3 }
  0x11   :  { %154 = shalt.err (!%p151_p7)
}
  0x12   :  { %23 = dma.hbm_to_vmem [thread:$0]  %s260_s0, 64, %s21_s10, [#allocation4]  }
  0x13   :  { %s155_s25 = scalar_lea.hbm %s261_s1, 64 }
  0x14   :  { %p156_p8 = scmp.ne.s32.totalorder %s261_s1, %s155_s25  ;;  %p159_p9 = scmp.lt.u32.totalorder %s155_s25, %s261_s1 }
  0x16   :  { %p161_p10 = pnand %p159_p9, %p156_p8 }
  0x18   :  { %164 = shalt.err (!%p161_p10)
}
  0x19   :  { %s165_s30 = scalar_lea.vmem %s35_s12, 64  ;;  %p170_p12 = scmp.lt.s32.totalorder %s35_s12, %s35_s12 }
  0x1a   :  { %p166_p11 = scmp.ne.s32.totalorder %s35_s12, %s165_s30  ;;  %p171_p13 = scmp.lt.s32.totalorder %s165_s30, %s165_s30 }
  0x1c   :  { %p172_p0 = por %p171_p13, %p170_p12 }
  0x1e   :  { %p173_p1 = pnand %p172_p0, %p166_p11 }
  0x20   :  { %176 = shalt.err (!%p173_p1)
}
  0x21   :  { %37 = dma.hbm_to_vmem [thread:$0]  %s261_s1, 64, %s35_s12, [#allocation7]  }
  0x22   :  { %199 = dma.done.wait [#allocation4], 64  }
  0x23   :  { %200 = vsyncadd [#allocation4], 4294967232 }
  0x24   :  { %201 = dma.done.wait [#allocation7], 64  }
  0x25   :  { %202 = vsyncadd [#allocation7], 4294967232  ;;  %v50_v0 = vlaneseq  ;;  %v207_v1 = vmov 0.0   ;;  %v55_v2 = vld [vmem:[#allocation3] sm:$0xf]  ;;  %vm91_vm1 = vcmask 1040384  }
  0x26   :  { %v56_v3 = vld [vmem:[#allocation6] sm:$0xf]  ;;  %s208_s1 = smov [#allocation8]  }
  0x27   :  { %vm52_vm0 = vcmp.lt.s32.totalorder %v50_v0, 512  ;;  %v57_v4 = vsub.f32 %v55_v2, %v56_v3  ;;  %v72_v8 = vshrl.u32 %v50_v0, 7  ;;  %s117_s4 = sshll.u32 %s208_s1, 4  ;;  %s118_s4 = int_to_ptr.vmem [resolvable:$true] %s117_s4 }
  0x28   :  { %54 = vst.msk [vmem:[#allocation2] sm:$0xf] %vm52_vm0, %v207_v1  ;;  %s177_s6 = scalar_lea.vmem %s118_s4, 128  ;;  %p182_p3 = scmp.lt.s32.totalorder %s118_s4, %s118_s4 }
  0x29   :  { %v58_v5 = vmul.f32 %v57_v4, %v57_v4  ;;  %v73_v9 = vsub.s32 0, %v72_v8  ;;  %v77_v10 = vsub.s32 1, %v72_v8  ;;  %v81_v11 = vsub.s32 2, %v72_v8  ;;  %p178_p2 = scmp.ne.s32.totalorder %s118_s4, %s177_s6  ;;  %p183_p4 = scmp.lt.s32.totalorder %s177_s6, %s177_s6 }
  0x2a   :  { %v85_v12 = vsub.s32 3, %v72_v8 }
  0x2b   :  { %p184_p5 = por %p183_p4, %p182_p3 }
  0x2d   :  { %p185_p6 = pnand %p184_p5, %p178_p2 }
  0x2f   :  { %v59_v6 = vld [vmem:[#allocation2] sm:$0xf] }
  0x30   :  { %v60_v7 = vadd.f32 %v59_v6, %v58_v5 }
  0x32   :  { %65 = vst.msk [vmem:[#allocation2] sm:$0xf] %vm52_vm0, %v60_v7 }
  0x39   :  { %v69_v13 = vld [vmem:[#allocation2] sm:$0xf] }
  0x3a   :  { %v74_v14 = vrot.slane %v69_v13, %v73_v9  ;;  %v78_v15 = vrot.slane %v69_v13, %v77_v10  ;;  %v82_v16 = vrot.slane %v69_v13, %v81_v11  ;;  %v86_v17 = vrot.slane %v69_v13, %v85_v12 }
  0x3c   :  { %v92_v18 = vsel %vm91_vm1, %v74_v14, 0.0  ;;  %v93_v19 = vsel %vm91_vm1, %v78_v15, 0.0  ;;  %v95_v20 = vsel %vm91_vm1, %v82_v16, 0.0  ;;  %v97_v22 = vsel %vm91_vm1, %v86_v17, 0.0 }
  0x3d   :  { %v94_v21 = vadd.f32 %v93_v19, %v92_v18 }
  0x3f   :  { %v96_v23 = vadd.f32 %v95_v20, %v94_v21 }
  0x41   :  { %v98_v24 = vadd.f32 %v97_v22, %v96_v23 }
  0x43   :  { %99 = vadd.xlane.f32.xlu0 %v98_v24 }
  0xd0   :  { %v100_v25 = vpop.xlane.xlu0 %99 }
  0xd1   :  { %v101_v26 = vrot.slane %v100_v25, 4 }
  0xd3   :  { %v102_v27 = vadd.f32 %v101_v26, %v100_v25 }
  0xd5   :  { %v103_v28 = vrot.slane %v102_v27, 2 }
  0xd7   :  { %v104_v29 = vadd.f32 %v103_v28, %v102_v27 }
  0xd9   :  { %v105_v30 = vrot.slane %v104_v29, 1 }
  0xdb   :  { %v106_v31 = vadd.f32 %v105_v30, %v104_v29 }
  0xdd   :  { %127 = vpush %v106_v31 }
 0x10e   :  { %s128_s5 = spop %127 }
 0x10f   :  { %v108_v32 = vstv %s128_s5 }
 0x110   :  { %110 = vst [vmem:[#allocation8] sm:$0xff] %v108_v32 }
 0x111   :  { %188 = shalt.err (!%p185_p6)
}
 0x112   :  { %s189_s9 = scalar_lea.hbm %s262_s2, 128 }
 0x113   :  { %p190_p7 = scmp.ne.s32.totalorder %s262_s2, %s189_s9  ;;  %p193_p8 = scmp.lt.u32.totalorder %s189_s9, %s262_s2 }
 0x115   :  { %p195_p9 = pnand %p193_p8, %p190_p7 }
 0x117   :  { %198 = shalt.err (!%p195_p9)
}
 0x118   :  { %120 = dma.vmem_to_hbm [thread:$0]  %s118_s4, 128, %s262_s2, [#allocation5]  }
 0x119   :  { %203 = dma.done.wait [#allocation5], 128  }
 0x11a   :  { %204 = vsyncadd [#allocation5], 4294967168 }
 0x11b   :  { %124 = vsyncpa [#allocation4], 1 }
 0x11c   :  { %125 = vsyncpa [#allocation7], 1 }
 0x11d   :  { %126 = vsyncpa [#allocation5], 1 }

</bundles_post_ra>
